<compile_context>
chip_gen: v7x
topology: tpu7x:2x2x1
jax: 0.10.0
libtpu: 0.0.40
codegen_flags: <defaults>
</compile_context>

<pallas_src>
import jax
import jax.numpy as jnp
from jax.experimental import pallas as pl
from jax.experimental.pallas import tpu as pltpu


def title_entity_kernel(map_ref, text_ref, out_ref):
    # map_ref : [Bb, T, S] block of title_map
    # text_ref: [Bb, S, H] block of encoded_text
    # out_ref : [Bb, H]    block of the output
    m = map_ref[...].astype(jnp.float32)            # [Bb, T, S]
    x = text_ref[...].astype(jnp.float32)           # [Bb, S, H]

    # Reduce over the title-entity axis first: sum_T(M @ X) == (sum_T M) @ X.
    colsum = jnp.sum(m, axis=1)                     # [Bb, S]
    # Normalization denominator reuses the same partial reduction.
    denom = jnp.sum(colsum, axis=1, keepdims=True)  # [Bb, 1]

    # Batched contraction over S as a broadcast multiply + sublane reduce (VPU/XLU).
    summed = jnp.sum(colsum[:, :, None] * x, axis=1)  # [Bb, H]

    out_ref[...] = (summed / denom).astype(out_ref.dtype)


def _pick_batch_tile(B, T, S, H, itemsize, vmem_budget_bytes=16 * 1024 * 1024):
    """Largest Bb that divides B and keeps double-buffered tiles under budget."""
    per_batch_bytes = 2 * (S * H + T * S + H) * itemsize  # 2x for double buffering
    bb = max(1, min(B, vmem_budget_bytes // max(per_batch_bytes, 1)))
    while B % bb:
        bb -= 1
    return bb


def title_entity_encoder(encoded_text, title_map):
    """encoded_text: [B, S, H]; title_map: [B, T, S] -> [B, H]."""
    B, S, H = encoded_text.shape
    _, T, _ = title_map.shape
    itemsize = jnp.dtype(encoded_text.dtype).itemsize
    Bb = _pick_batch_tile(B, T, S, H, itemsize)

    return pl.pallas_call(
        title_entity_kernel,
        out_shape=jax.ShapeDtypeStruct((B, H), encoded_text.dtype),
        grid_spec=pltpu.PrefetchScalarGridSpec(
            num_scalar_prefetch=0,
            grid=(B // Bb,),
            in_specs=[
                # Block over batch only; T/S/H are full extents so the (8,128)
                # last-two-dims constraint is satisfied for arbitrary sizes.
                pl.BlockSpec((Bb, T, S), lambda b: (b, 0, 0)),
                pl.BlockSpec((Bb, S, H), lambda b: (b, 0, 0)),
            ],
            out_specs=pl.BlockSpec((Bb, H), lambda b: (b, 0)),
        ),
        compiler_params=pltpu.CompilerParams(
            dimension_semantics=("parallel",),
        ),
    )(title_map, encoded_text)


def title_entity_encoder_ref(encoded_text, title_map):
    tv = jnp.einsum("bts,bsh->bth", title_map, encoded_text)
    return tv.sum(axis=1) / title_map.sum(axis=(1, 2))[:, None]


if __name__ == "__main__":
    # Small shapes consistent with the module: batch=2, seq=16, hidden=32, title entities=8.
    B, S, H, T = 2, 16, 32, 8
    key = jax.random.PRNGKey(0)
    k1, k2 = jax.random.split(key)
    encoded_text = jax.random.normal(k1, (B, S, H), dtype=jnp.float32)
    # Positive map weights (padded one-hot / soft mapping; keeps denominator nonzero,
    # matching PyTorch semantics which would also produce inf for an all-zero map).
    title_map = jax.random.uniform(k2, (B, T, S), dtype=jnp.float32)

    out = title_entity_encoder(encoded_text, title_map)
    jax.block_until_ready(out)

    ref = title_entity_encoder_ref(encoded_text, title_map)
    assert out.shape == (B, H)
    assert jnp.allclose(out, ref, atol=1e-5, rtol=1e-5), "mismatch vs reference"

    print("KERNEL_OK")
</pallas_src>

<mosaic_0001>
module attributes {stable_mosaic.version = 11 : i64} {
  func.func @title_entity_kernel(%arg0: i32, %arg1: memref<2x8x16xf32, #tpu.memory_space<vmem>>, %arg2: memref<2x16x32xf32, #tpu.memory_space<vmem>>, %arg3: memref<2x32xf32, #tpu.memory_space<vmem>>) attributes {dimension_semantics = [#tpu.dimension_semantics<parallel>], iteration_bounds = array<i64: 1>, scalar_prefetch = 0 : i64, scratch_operands = 0 : i64, tpu.core_type = #tpu.core_type<tc>, window_params = [{transform_indices = @transform_0, window_bounds = array<i64: 2, 8, 16>}, {transform_indices = @transform_1, window_bounds = array<i64: 2, 16, 32>}, {transform_indices = @transform_2, window_bounds = array<i64: 2, 32>}]} {
    %c0 = arith.constant 0 : index
    %c0_0 = arith.constant 0 : index
    %c0_1 = arith.constant 0 : index
    %0 = vector.load %arg1[%c0, %c0_0, %c0_1] : memref<2x8x16xf32, #tpu.memory_space<vmem>>, vector<2x8x16xf32>
    %c0_2 = arith.constant 0 : index
    %c0_3 = arith.constant 0 : index
    %c0_4 = arith.constant 0 : index
    %1 = vector.load %arg2[%c0_2, %c0_3, %c0_4] : memref<2x16x32xf32, #tpu.memory_space<vmem>>, vector<2x16x32xf32>
    %cst = arith.constant dense<0.000000e+00> : vector<2x16xf32>
    %2 = vector.multi_reduction <add>, %0, %cst [1] : vector<2x8x16xf32> to vector<2x16xf32>
    %cst_5 = arith.constant dense<0.000000e+00> : vector<2xf32>
    %3 = vector.multi_reduction <add>, %2, %cst_5 [1] : vector<2x16xf32> to vector<2xf32>
    %4 = vector.shape_cast %3 : vector<2xf32> to vector<2x1xf32>
    %5 = vector.shape_cast %2 : vector<2x16xf32> to vector<2x16x1xf32>
    %6 = vector.broadcast %5 : vector<2x16x1xf32> to vector<2x16x32xf32>
    %7 = arith.mulf %6, %1 : vector<2x16x32xf32>
    %cst_6 = arith.constant dense<0.000000e+00> : vector<2x32xf32>
    %8 = vector.multi_reduction <add>, %7, %cst_6 [1] : vector<2x16x32xf32> to vector<2x32xf32>
    %9 = vector.broadcast %4 : vector<2x1xf32> to vector<2x32xf32>
    %10 = arith.divf %8, %9 : vector<2x32xf32>
    %c0_7 = arith.constant 0 : index
    %c0_8 = arith.constant 0 : index
    %11 = vector.load %arg3[%c0_7, %c0_8] : memref<2x32xf32, #tpu.memory_space<vmem>>, vector<2x32xf32>
    tpu.vector_store %arg3[%c0_7, %c0_8], %10 {strides = array<i32>} : memref<2x32xf32, #tpu.memory_space<vmem>>, vector<2x32xf32>,
    return
  }
  func.func @transform_0(%arg0: i32) -> (i32, i32, i32) {
    %c0_i32 = arith.constant 0 : i32
    %c0_i32_0 = arith.constant 0 : i32
    %c0_i32_1 = arith.constant 0 : i32
    return %arg0, %c0_i32, %c0_i32_0 : i32, i32, i32
  }
  func.func @transform_1(%arg0: i32) -> (i32, i32, i32) {
    %c0_i32 = arith.constant 0 : i32
    %c0_i32_0 = arith.constant 0 : i32
    %c0_i32_1 = arith.constant 0 : i32
    return %arg0, %c0_i32, %c0_i32_0 : i32, i32, i32
  }
  func.func @transform_2(%arg0: i32) -> (i32, i32) {
    %c0_i32 = arith.constant 0 : i32
    %c0_i32_0 = arith.constant 0 : i32
    return %arg0, %c0_i32 : i32, i32
  }
}

</mosaic_0001>

<bundles_post_ra>
// kernel: tpu_custom_call.1
= control target key start
LH: loop header
LB: loop body
LE: loop exit
PB: predicated region body
PF: predicated region fallthrough
CT: control target
= control target key end

     0   :  { %7 = vsyncpa [#allocation3], 0  ;;  %s277_s0 = inlined_call_operand.hbm [shape: f32[2,8,16], index: 0, kind: input, shape index: {}]   ;;  %s278_s1 = inlined_call_operand.hbm [shape: f32[2,16,32], index: 1, kind: input, shape index: {}]   ;;  %s279_s2 = inlined_call_operand.hbm [shape: f32[2,32], index: 2, kind: output, shape index: {}]  }
   0x1   :  { %8 = vsyncpa [#allocation6], 0 }
   0x2   :  { %9 = vsyncpa [#allocation4], 0  ;;  %s219_s9 = smov [#allocation2]   ;;  %s147_s13 = scalar_lea.hbm %s277_s0, 256 }
   0x3   :  { %s15_s10 = sshll.u32 %s219_s9, 4  ;;  %p148_p0 = scmp.ne.s32.totalorder %s277_s0, %s147_s13  ;;  %s16_s10 = int_to_ptr.vmem [resolvable:$true] %s15_s10 }
   0x4   :  { %p151_p1 = scmp.lt.u32.totalorder %s147_s13, %s277_s0 }
   0x6   :  { %p153_p2 = pnand %p151_p1, %p148_p0 }
   0x8   :  { %156 = shalt.err (!%p153_p2)
}
   0x9   :  { %s157_s18 = scalar_lea.vmem %s16_s10, 256  ;;  %p162_p4 = scmp.lt.s32.totalorder %s16_s10, %s16_s10 }
   0xa   :  { %p158_p3 = scmp.ne.s32.totalorder %s16_s10, %s157_s18  ;;  %p163_p5 = scmp.lt.s32.totalorder %s157_s18, %s157_s18 }
   0xc   :  { %p164_p6 = por %p163_p5, %p162_p4 }
   0xe   :  { %p165_p7 = pnand %p164_p6, %p158_p3 }
  0x10   :  { %168 = shalt.err (!%p165_p7)
}
  0x11   :  { %s220_s19 = smov 128   ;;  %s221_s20 = smov 8  }
  0x12   :  { %21 = dma.hbm_to_vmem [thread:$0]  %s277_s0, 256, %s16_s10, [#allocation3], %s220_s19, %s220_s19, %s221_s20  }
  0x13   :  { %s222_s23 = smov [#allocation5]   ;;  %s169_s27 = scalar_lea.hbm %s278_s1, 512 }
  0x14   :  { %s27_s24 = sshll.u32 %s222_s23, 4  ;;  %p170_p8 = scmp.ne.s32.totalorder %s278_s1, %s169_s27  ;;  %s28_s24 = int_to_ptr.vmem [resolvable:$true] %s27_s24 }
  0x15   :  { %p173_p9 = scmp.lt.u32.totalorder %s169_s27, %s278_s1 }
  0x17   :  { %p175_p10 = pnand %p173_p9, %p170_p8 }
  0x19   :  { %178 = shalt.err (!%p175_p10)
}
  0x1a   :  { %s179_s4 = scalar_lea.vmem %s28_s24, 512  ;;  %p184_p12 = scmp.lt.s32.totalorder %s28_s24, %s28_s24 }
  0x1b   :  { %p180_p11 = scmp.ne.s32.totalorder %s28_s24, %s179_s4  ;;  %p185_p13 = scmp.lt.s32.totalorder %s179_s4, %s179_s4 }
  0x1d   :  { %p186_p0 = por %p185_p13, %p184_p12 }
  0x1f   :  { %p187_p1 = pnand %p186_p0, %p180_p11 }
  0x21   :  { %190 = shalt.err (!%p187_p1)
}
  0x22   :  { %33 = dma.hbm_to_vmem [thread:$0]  %s278_s1, 512, %s28_s24, [#allocation6], %s220_s19, %s220_s19, %s221_s20  }
  0x23   :  { %213 = dma.done.wait [#allocation3], 256  }
  0x24   :  { %214 = vsyncadd [#allocation3], 4294967040 }
  0x25   :  { %215 = dma.done.wait [#allocation6], 512  }
  0x26   :  { %216 = vsyncadd [#allocation6], 4294966784  ;;  %vm46_vm0 = vcmask 130048   ;;  %v40_v0 = vld [vmem:[#allocation2] sm:$0xff]  ;;  %v41_v1 = vld [vmem:[#allocation2 + $0x8] sm:$0xff]  ;;  %vm63_vm1 = vcmask 1041409  }
  0x27   :  { %v47_v2 = vsel %vm46_vm0, %v40_v0, 0.0  ;;  %v54_v3 = vsel %vm46_vm0, %v41_v1, 0.0  ;;  %vm66_vm2 = vcmask 123904   ;;  %v42_v20 = vld [vmem:[#allocation5] sm:$0xff]  ;;  %v43_v21 = vld [vmem:[#allocation5 + $0x8] sm:$0xff]  ;;  %vm88_vm3 = vcmask 261120  }
  0x28   :  { %v48_v4 = vrot.slane %v47_v2, 4  ;;  %v55_v5 = vrot.slane %v54_v3, 4  ;;  %v45_v28 = vld [vmem:[#allocation5 + $0x18] sm:$0xff]  ;;  %v44_v31 = vld [vmem:[#allocation5 + $0x10] sm:$0xff]  ;;  %s223_s1 = smov [#allocation7]   ;;  %vm120_vm4 = vcmask 254976  }
  0x29   :  { %s128_s6 = sshll.u32 %s223_s1, 4  ;;  %s129_s6 = int_to_ptr.vmem [resolvable:$true] %s128_s6 }
  0x2a   :  { %v49_v6 = vadd.f32 %v48_v4, %v47_v2  ;;  %v56_v7 = vadd.f32 %v55_v5, %v54_v3  ;;  %s191_s7 = scalar_lea.vmem %s129_s6, 32  ;;  %p196_p3 = scmp.lt.s32.totalorder %s129_s6, %s129_s6 }
  0x2b   :  { %p192_p2 = scmp.ne.s32.totalorder %s129_s6, %s191_s7  ;;  %p197_p4 = scmp.lt.s32.totalorder %s191_s7, %s191_s7 }
  0x2c   :  { %v50_v8 = vrot.slane %v49_v6, 2  ;;  %v57_v9 = vrot.slane %v56_v7, 2 }
  0x2d   :  { %p198_p5 = por %p197_p4, %p196_p3 }
  0x2e   :  { %v51_v10 = vadd.f32 %v50_v8, %v49_v6  ;;  %v58_v11 = vadd.f32 %v57_v9, %v56_v7 }
  0x2f   :  { %p199_p6 = pnand %p198_p5, %p192_p2 }
  0x30   :  { %v52_v12 = vrot.slane %v51_v10, 1  ;;  %v59_v13 = vrot.slane %v58_v11, 1 }
  0x32   :  { %v53_v14 = vadd.f32 %v52_v12, %v51_v10  ;;  %v60_v15 = vadd.f32 %v59_v13, %v58_v11 }
  0x34   :  { %v64_v16 = vsel %vm63_vm1, %v60_v15, %v53_v14  ;;  %82 = vbcast.lane.b32.xlu1 %v60_v15, 264 }
  0x35   :  { %v67_v17 = vsel %vm66_vm2, %v64_v16, 0.0 }
  0x36   :  { %68 = vadd.xlane.f32.xlu0 %v67_v17 }
  0x38   :  { %71 = vbcast.lane.b32.xlu1 %v53_v14, 256 }
  0x3c   :  { %75 = vbcast.lane.b32.xlu1 %v53_v14, 264 }
  0x4c   :  { %78 = vbcast.lane.b32.xlu0 %v60_v15, 256 }
  0xa6   :  { %v83_v18 = vpop.permute.xlu1 %82 }
  0xa7   :  { %v87_v32 = vmul.f32 %v83_v18, %v45_v28 }
  0xa9   :  { %v99_v36 = vsel %vm88_vm3, %v87_v32, 0.0 }
  0xaa   :  { %v72_v19 = vpop.permute.xlu1 %71 }
  0xab   :  { %v84_v23 = vmul.f32 %v72_v19, %v42_v20 }
  0xad   :  { %v89_v25 = vsel %vm88_vm3, %v84_v23, 0.0 }
  0xae   :  { %v76_v22 = vpop.permute.xlu1 %75 }
  0xaf   :  { %v85_v24 = vmul.f32 %v76_v22, %v43_v21 }
  0xb1   :  { %v90_v26 = vsel %vm88_vm3, %v85_v24, 0.0 }
  0xb2   :  { %v91_v27 = vadd.f32 %v90_v26, %v89_v25 }
  0xb4   :  { %v92_v29 = vrot.slane %v91_v27, 4 }
  0xb6   :  { %v93_v33 = vadd.f32 %v92_v29, %v91_v27 }
  0xb8   :  { %v94_v39 = vrot.slane %v93_v33, 2 }
  0xba   :  { %v95_v42 = vadd.f32 %v94_v39, %v93_v33 }
  0xbc   :  { %v96_v45 = vrot.slane %v95_v42, 1 }
  0xbe   :  { %v97_v49 = vadd.f32 %v96_v45, %v95_v42 }
  0xc3   :  { %v69_v30 = vpop.xlane.xlu0 %68 }
  0xc4   :  { %v108_v37 = vrot.slane %v69_v30, 1  ;;  %143 = vrcp.f32 %v69_v30 }
  0xc6   :  { %145 = vrcp.f32 %v108_v37 }
  0xc7   :  { %v79_v34 = vpop.permute.xlu0 %78 }
  0xc8   :  { %v86_v35 = vmul.f32 %v79_v34, %v44_v31 }
  0xca   :  { %v98_v38 = vsel %vm88_vm3, %v86_v35, 0.0 }
  0xcb   :  { %v100_v40 = vadd.f32 %v99_v36, %v98_v38 }
  0xcd   :  { %v101_v41 = vrot.slane %v100_v40, 4 }
  0xce   :  { %v144_v48 = vpop.eup %143 }
  0xcf   :  { %v102_v43 = vadd.f32 %v101_v41, %v100_v40  ;;  %v112_v53 = vmul.f32 %v144_v48, %v97_v49 }
  0xd0   :  { %v146_v51 = vpop.eup %145 }
  0xd1   :  { %v103_v44 = vrot.slane %v102_v43, 2 }
  0xd3   :  { %v104_v46 = vadd.f32 %v103_v44, %v102_v43 }
  0xd5   :  { %v105_v47 = vrot.slane %v104_v46, 1 }
  0xd7   :  { %v106_v50 = vadd.f32 %v105_v47, %v104_v46 }
  0xd9   :  { %v114_v52 = vmul.f32 %v146_v51, %v106_v50 }
  0xdb   :  { %v117_v54 = vrot.slane %v114_v52, 7 }
  0xdd   :  { %v118_v55 = vsel %vm63_vm1, %v117_v54, %v112_v53 }
  0xde   :  { %121 = vst.msk [vmem:[#allocation7] sm:$0x3] %vm120_vm4, %v118_v55 }
  0xdf   :  { %202 = shalt.err (!%p199_p6)
}
  0xe0   :  { %s203_s10 = scalar_lea.hbm %s279_s2, 32 }
  0xe1   :  { %p204_p7 = scmp.ne.s32.totalorder %s279_s2, %s203_s10  ;;  %p207_p8 = scmp.lt.u32.totalorder %s203_s10, %s279_s2 }
  0xe3   :  { %p209_p9 = pnand %p207_p8, %p204_p7 }
  0xe5   :  { %212 = shalt.err (!%p209_p9)
}
  0xe6   :  { %131 = dma.vmem_to_hbm [thread:$0]  %s129_s6, 32, %s279_s2, [#allocation4]  }
  0xe7   :  { %217 = dma.done.wait [#allocation4], 32  }
  0xe8   :  { %218 = vsyncadd [#allocation4], 4294967264 }
  0xe9   :  { %135 = vsyncpa [#allocation3], 1 }
  0xea   :  { %136 = vsyncpa [#allocation6], 1 }
  0xeb   :  { %137 = vsyncpa [#allocation4], 1 }

</bundles_post_ra>
